<compile_context>
chip_gen: v7x
topology: tpu7x:2x2x1
jax: 0.10.0
libtpu: 0.0.40
codegen_flags: <defaults>
</compile_context>

<pallas_src>
import jax
import jax.numpy as jnp
from jax.experimental import pallas as pl
from jax.experimental.pallas import tpu as pltpu

BN_EPS = 1e-5
LANE = 128


def mlp_kernel(x_ref, w1_ref, gamma_ref, beta_ref, w2_ref, o_ref):
    # First linear: (B, D_in_p) @ (D_in_p, H_p) -> (B, H_p); f32 MXU accumulate.
    h = jnp.dot(x_ref[...], w1_ref[...], preferred_element_type=jnp.float32)

    # BatchNorm1d, training-mode forward: biased batch statistics over batch dim.
    mean = jnp.mean(h, axis=0, keepdims=True)           # (1, H_p)
    hc = h - mean                                       # centered; reused below
    var = jnp.mean(hc * hc, axis=0, keepdims=True)      # (1, H_p), biased
    # Fold gamma into the inverse std: per-element work is one mul-add.
    scale = gamma_ref[...] * jax.lax.rsqrt(var + BN_EPS)  # (1, H_p), EUP rsqrt
    h_hat = hc * scale + beta_ref[...]

    # ReLU (f32 on the VPU).
    h_relu = jnp.maximum(h_hat, 0.0)

    # Second linear: (B, H_p) @ (H_p, D_out_p) -> (B, D_out_p); lane-dense output.
    o_ref[...] = jnp.dot(
        h_relu.astype(w2_ref.dtype), w2_ref[...],
        preferred_element_type=jnp.float32,
    ).astype(o_ref.dtype)


def _round_up(n, m):
    return ((n + m - 1) // m) * m


def mlp_forward(x, w1_t, gamma, beta, w2_t):
    """x: (B, D_in), w1_t: (D_in, H), gamma/beta: (1, H), w2_t: (H, D_out).

    Weights are pre-transposed to (in, out) so the kernel does plain x @ W.
    """
    B, D_in = x.shape
    H = w1_t.shape[1]
    D_out = w2_t.shape[1]
    # Batch rows feed the BN statistics; padding rows would change the result,
    # so we require sublane alignment instead of zero-padding the batch.
    assert B % 8 == 0, "batch must be a multiple of 8 (sublane) — do not zero-pad it"

    # Pad every lane dimension to a multiple of 128 for dense, unmasked vector
    # loads/stores and 128-aligned MXU N dims.
    D_in_p = _round_up(D_in, LANE)
    H_p = _round_up(H, LANE)
    D_out_p = _round_up(D_out, LANE)

    x_p = jnp.pad(x, ((0, 0), (0, D_in_p - D_in)))
    w1_p = jnp.pad(w1_t, ((0, D_in_p - D_in), (0, H_p - H)))
    gamma_p = jnp.pad(gamma, ((0, 0), (0, H_p - H)))   # pad with 0 -> padded cols stay 0
    beta_p = jnp.pad(beta, ((0, 0), (0, H_p - H)))
    w2_p = jnp.pad(w2_t, ((0, H_p - H), (0, D_out_p - D_out)))

    out_p = pl.pallas_call(
        mlp_kernel,
        out_shape=jax.ShapeDtypeStruct((B, D_out_p), x.dtype),
        grid_spec=pltpu.PrefetchScalarGridSpec(
            num_scalar_prefetch=0,
            grid=(1,),
            in_specs=[
                pl.BlockSpec((B, D_in_p), lambda i: (0, 0)),
                pl.BlockSpec((D_in_p, H_p), lambda i: (0, 0)),
                # gamma/beta: tiny, constant across the grid -> stay resident.
                pl.BlockSpec((1, H_p), lambda i: (0, 0)),
                pl.BlockSpec((1, H_p), lambda i: (0, 0)),
                pl.BlockSpec((H_p, D_out_p), lambda i: (0, 0)),
            ],
            out_specs=pl.BlockSpec((B, D_out_p), lambda i: (0, 0)),
        ),
        compiler_params=pltpu.CompilerParams(
            dimension_semantics=("arbitrary",),
        ),
    )(x_p, w1_p, gamma_p, beta_p, w2_p)

    # Strip the zero-padded output columns outside the kernel.
    return out_p[:, :D_out]


def reference_forward(x, w1_t, gamma, beta, w2_t):
    h = x @ w1_t
    mean = jnp.mean(h, axis=0, keepdims=True)
    var = jnp.mean((h - mean) ** 2, axis=0, keepdims=True)
    h = (h - mean) / jnp.sqrt(var + BN_EPS) * gamma + beta
    h = jnp.maximum(h, 0.0)
    return h @ w2_t


if __name__ == "__main__":
    # Small shapes consistent with MLP.forward: x is (batch, input_dim).
    batch, input_dim, hidden_dim, output_dim = 8, 32, 64, 16

    key = jax.random.PRNGKey(0)
    kx, kw1, kw2 = jax.random.split(key, 3)

    x = jax.random.normal(kx, (batch, input_dim), dtype=jnp.float32)

    # PyTorch-style uniform init bounds for Linear (bias=False in the module).
    bound1 = 1.0 / (input_dim ** 0.5)
    bound2 = 1.0 / (hidden_dim ** 0.5)
    # PyTorch weight is (out, in); store transposed (in, out) for x @ W.
    w1_t = jax.random.uniform(kw1, (input_dim, hidden_dim),
                              minval=-bound1, maxval=bound1, dtype=jnp.float32)
    w2_t = jax.random.uniform(kw2, (hidden_dim, output_dim),
                              minval=-bound2, maxval=bound2, dtype=jnp.float32)
    # BatchNorm1d affine params at their default init (gamma=1, beta=0).
    gamma = jnp.ones((1, hidden_dim), dtype=jnp.float32)
    beta = jnp.zeros((1, hidden_dim), dtype=jnp.float32)

    out = mlp_forward(x, w1_t, gamma, beta, w2_t)
    out = jax.block_until_ready(out)

    ref = reference_forward(x, w1_t, gamma, beta, w2_t)
    assert out.shape == (batch, output_dim)
    assert jnp.allclose(out, ref, atol=1e-4, rtol=1e-4)

    print("KERNEL_OK")
</pallas_src>

<mosaic_0001>
module attributes {stable_mosaic.version = 11 : i64} {
  func.func @mlp_kernel(%arg0: i32, %arg1: memref<8x128xf32, #tpu.memory_space<vmem>>, %arg2: memref<128x128xf32, #tpu.memory_space<vmem>>, %arg3: memref<1x128xf32, #tpu.memory_space<vmem>>, %arg4: memref<1x128xf32, #tpu.memory_space<vmem>>, %arg5: memref<128x128xf32, #tpu.memory_space<vmem>>, %arg6: memref<8x128xf32, #tpu.memory_space<vmem>>) attributes {dimension_semantics = [#tpu.dimension_semantics<arbitrary>], iteration_bounds = array<i64: 1>, scalar_prefetch = 0 : i64, scratch_operands = 0 : i64, tpu.core_type = #tpu.core_type<tc>, window_params = [{pipeline_mode = #tpu.pipeline_mode<synchronous>, transform_indices = @transform_0, window_bounds = array<i64: 8, 128>}, {pipeline_mode = #tpu.pipeline_mode<synchronous>, transform_indices = @transform_1, window_bounds = array<i64: 128, 128>}, {pipeline_mode = #tpu.pipeline_mode<synchronous>, transform_indices = @transform_2, window_bounds = array<i64: 1, 128>}, {pipeline_mode = #tpu.pipeline_mode<synchronous>, transform_indices = @transform_3, window_bounds = array<i64: 1, 128>}, {pipeline_mode = #tpu.pipeline_mode<synchronous>, transform_indices = @transform_4, window_bounds = array<i64: 128, 128>}, {pipeline_mode = #tpu.pipeline_mode<synchronous>, transform_indices = @transform_5, window_bounds = array<i64: 8, 128>}]} {
    %c0 = arith.constant 0 : index
    %c0_0 = arith.constant 0 : index
    %0 = vector.load %arg1[%c0, %c0_0] : memref<8x128xf32, #tpu.memory_space<vmem>>, vector<8x128xf32>
    %c0_1 = arith.constant 0 : index
    %c0_2 = arith.constant 0 : index
    %1 = vector.load %arg2[%c0_1, %c0_2] : memref<128x128xf32, #tpu.memory_space<vmem>>, vector<128x128xf32>
    %cst = arith.constant dense<0.000000e+00> : vector<8x128xf32>
    %2 = tpu.matmul %0, %1, %cst {dimension_numbers = #tpu.dot_dimension_numbers<[1], [0], [0], [1], [0, 0, 1, 1], [], []>} : vector<8x128xf32>, vector<128x128xf32>, vector<8x128xf32> -> vector<8x128xf32>
    %cst_3 = arith.constant dense<0.000000e+00> : vector<128xf32>
    %3 = vector.multi_reduction <add>, %2, %cst_3 [0] : vector<8x128xf32> to vector<128xf32>
    %4 = vector.shape_cast %3 : vector<128xf32> to vector<1x128xf32>
    %cst_4 = arith.constant 8.000000e+00 : f32
    %5 = vector.broadcast %cst_4 : f32 to vector<1x128xf32>
    %6 = arith.divf %4, %5 : vector<1x128xf32>
    %7 = vector.broadcast %6 : vector<1x128xf32> to vector<8x128xf32>
    %8 = arith.subf %2, %7 : vector<8x128xf32>
    %9 = arith.mulf %8, %8 : vector<8x128xf32>
    %cst_5 = arith.constant dense<0.000000e+00> : vector<128xf32>
    %10 = vector.multi_reduction <add>, %9, %cst_5 [0] : vector<8x128xf32> to vector<128xf32>
    %11 = vector.shape_cast %10 : vector<128xf32> to vector<1x128xf32>
    %cst_6 = arith.constant 8.000000e+00 : f32
    %12 = vector.broadcast %cst_6 : f32 to vector<1x128xf32>
    %13 = arith.divf %11, %12 : vector<1x128xf32>
    %c0_7 = arith.constant 0 : index
    %c0_8 = arith.constant 0 : index
    %14 = vector.load %arg3[%c0_7, %c0_8] : memref<1x128xf32, #tpu.memory_space<vmem>>, vector<1x128xf32>
    %cst_9 = arith.constant 9.99999974E-6 : f32
    %15 = vector.broadcast %cst_9 : f32 to vector<1x128xf32>
    %16 = arith.addf %13, %15 : vector<1x128xf32>
    %17 = math.rsqrt %16 : vector<1x128xf32>
    %18 = arith.mulf %14, %17 : vector<1x128xf32>
    %19 = vector.broadcast %18 : vector<1x128xf32> to vector<8x128xf32>
    %20 = arith.mulf %8, %19 : vector<8x128xf32>
    %c0_10 = arith.constant 0 : index
    %c0_11 = arith.constant 0 : index
    %21 = vector.load %arg4[%c0_10, %c0_11] : memref<1x128xf32, #tpu.memory_space<vmem>>, vector<1x128xf32>
    %22 = vector.broadcast %21 : vector<1x128xf32> to vector<8x128xf32>
    %23 = arith.addf %20, %22 : vector<8x128xf32>
    %cst_12 = arith.constant 0.000000e+00 : f32
    %24 = vector.broadcast %cst_12 : f32 to vector<8x128xf32>
    %25 = arith.maximumf %23, %24 : vector<8x128xf32>
    %c0_13 = arith.constant 0 : index
    %c0_14 = arith.constant 0 : index
    %26 = vector.load %arg5[%c0_13, %c0_14] : memref<128x128xf32, #tpu.memory_space<vmem>>, vector<128x128xf32>
    %cst_15 = arith.constant dense<0.000000e+00> : vector<8x128xf32>
    %27 = tpu.matmul %25, %26, %cst_15 {dimension_numbers = #tpu.dot_dimension_numbers<[1], [0], [0], [1], [0, 0, 1, 1], [], []>} : vector<8x128xf32>, vector<128x128xf32>, vector<8x128xf32> -> vector<8x128xf32>
    %c0_16 = arith.constant 0 : index
    %c0_17 = arith.constant 0 : index
    %28 = vector.load %arg6[%c0_16, %c0_17] : memref<8x128xf32, #tpu.memory_space<vmem>>, vector<8x128xf32>
    tpu.vector_store %arg6[%c0_16, %c0_17], %27 {strides = array<i32>} : memref<8x128xf32, #tpu.memory_space<vmem>>, vector<8x128xf32>,
    return
  }
  func.func @transform_0(%arg0: i32) -> (i32, i32) {
    %c0_i32 = arith.constant 0 : i32
    %c0_i32_0 = arith.constant 0 : i32
    %c0_i32_1 = arith.constant 0 : i32
    return %c0_i32, %c0_i32_0 : i32, i32
  }
  func.func @transform_1(%arg0: i32) -> (i32, i32) {
    %c0_i32 = arith.constant 0 : i32
    %c0_i32_0 = arith.constant 0 : i32
    %c0_i32_1 = arith.constant 0 : i32
    return %c0_i32, %c0_i32_0 : i32, i32
  }
  func.func @transform_2(%arg0: i32) -> (i32, i32) {
    %c0_i32 = arith.constant 0 : i32
    %c0_i32_0 = arith.constant 0 : i32
    %c0_i32_1 = arith.constant 0 : i32
    return %c0_i32, %c0_i32_0 : i32, i32
  }
  func.func @transform_3(%arg0: i32) -> (i32, i32) {
    %c0_i32 = arith.constant 0 : i32
    %c0_i32_0 = arith.constant 0 : i32
    %c0_i32_1 = arith.constant 0 : i32
    return %c0_i32, %c0_i32_0 : i32, i32
  }
  func.func @transform_4(%arg0: i32) -> (i32, i32) {
    %c0_i32 = arith.constant 0 : i32
    %c0_i32_0 = arith.constant 0 : i32
    %c0_i32_1 = arith.constant 0 : i32
    return %c0_i32, %c0_i32_0 : i32, i32
  }
  func.func @transform_5(%arg0: i32) -> (i32, i32) {
    %c0_i32 = arith.constant 0 : i32
    %c0_i32_0 = arith.constant 0 : i32
    %c0_i32_1 = arith.constant 0 : i32
    return %c0_i32, %c0_i32_0 : i32, i32
  }
}

</mosaic_0001>

<bundles_post_ra>
// kernel: tpu_custom_call.1
= control target key start
LH: loop header
LB: loop body
LE: loop exit
PB: predicated region body
PF: predicated region fallthrough
CT: control target
= control target key end

     0   :  { %10 = vsyncpa [#allocation3], 0  ;;  %s660_s0 = inlined_call_operand.hbm [shape: f32[8,128], index: 0, kind: input, shape index: {}]   ;;  %s661_s1 = inlined_call_operand.hbm [shape: f32[128,128], index: 1, kind: input, shape index: {}]   ;;  %s662_s2 = inlined_call_operand.vmem [shape: f32[1,128], index: 2, kind: input, shape index: {}]   ;;  %s663_s3 = inlined_call_operand.vmem [shape: f32[1,128], index: 3, kind: input, shape index: {}]   ;;  %s664_s4 = inlined_call_operand.hbm [shape: f32[128,128], index: 4, kind: input, shape index: {}]   ;;  %s665_s5 = inlined_call_operand.hbm [shape: f32[8,128], index: 5, kind: output, shape index: {}]  }
   0x1   :  { %11 = vsyncpa [#allocation6], 0 }
   0x2   :  { %12 = vsyncpa [#allocation4], 0  ;;  %s545_s18 = smov [#allocation5]   ;;  %s451_s22 = scalar_lea.hbm %s661_s1, 2048 }
   0x3   :  { %s28_s19 = sshll.u32 %s545_s18, 4  ;;  %p452_p0 = scmp.ne.s32.totalorder %s661_s1, %s451_s22  ;;  %s29_s19 = int_to_ptr.vmem [resolvable:$true] %s28_s19 }
   0x4   :  { %p455_p1 = scmp.lt.u32.totalorder %s451_s22, %s661_s1 }
   0x6   :  { %p457_p2 = pnand %p455_p1, %p452_p0 }
   0x8   :  { %460 = shalt.err (!%p457_p2)
}
   0x9   :  { %s461_s27 = scalar_lea.vmem %s29_s19, 2048  ;;  %p466_p4 = scmp.lt.s32.totalorder %s29_s19, %s29_s19 }
   0xa   :  { %p462_p3 = scmp.ne.s32.totalorder %s29_s19, %s461_s27  ;;  %p467_p5 = scmp.lt.s32.totalorder %s461_s27, %s461_s27 }
   0xc   :  { %p468_p6 = por %p467_p5, %p466_p4 }
   0xe   :  { %p469_p7 = pnand %p468_p6, %p462_p3 }
  0x10   :  { %472 = shalt.err (!%p469_p7)
}
  0x11   :  { %s546_s28 = smov 128   ;;  %s547_s29 = smov 8  }
  0x12   :  { %34 = dma.hbm_to_vmem [thread:$0]  %s661_s1, 2048, %s29_s19, [#allocation6], %s546_s28, %s546_s28, %s547_s29  }
  0x13   :  { %s548_s7 = smov [#allocation2]   ;;  %s549_s9 = smov [#allocation7]  }
  0x14   :  { %s19_s8 = sshll.u32 %s548_s7, 4  ;;  %s44_s10 = sshll.u32 %s549_s9, 4  ;;  %s20_s8 = int_to_ptr.vmem [resolvable:$true] %s19_s8  ;;  %s45_s10 = int_to_ptr.vmem [resolvable:$true] %s44_s10 }
  0x15   :  { %s473_s13 = scalar_lea.hbm %s660_s0, 128 }
  0x16   :  { %p474_p8 = scmp.ne.s32.totalorder %s660_s0, %s473_s13  ;;  %p477_p9 = scmp.lt.u32.totalorder %s473_s13, %s660_s0 }
  0x18   :  { %p479_p10 = pnand %p477_p9, %p474_p8 }
  0x1a   :  { %482 = shalt.err (!%p479_p10)
}
  0x1b   :  { %s483_s1 = scalar_lea.vmem %s20_s8, 128  ;;  %p488_p12 = scmp.lt.s32.totalorder %s20_s8, %s20_s8 }
  0x1c   :  { %p484_p11 = scmp.ne.s32.totalorder %s20_s8, %s483_s1  ;;  %p489_p13 = scmp.lt.s32.totalorder %s483_s1, %s483_s1 }
  0x1e   :  { %p490_p0 = por %p489_p13, %p488_p12 }
  0x20   :  { %p491_p1 = pnand %p490_p0, %p484_p11 }
  0x22   :  { %494 = shalt.err (!%p491_p1)
}
  0x23   :  { %22 = dma.hbm_to_vmem [thread:$0]  %s660_s0, 128, %s20_s8, [#allocation3]  }
  0x24   :  { %s495_s22 = scalar_lea.hbm %s664_s4, 2048 }
  0x25   :  { %p496_p2 = scmp.ne.s32.totalorder %s664_s4, %s495_s22  ;;  %p499_p3 = scmp.lt.u32.totalorder %s495_s22, %s664_s4 }
  0x27   :  { %p501_p4 = pnand %p499_p3, %p496_p2 }
  0x29   :  { %504 = shalt.err (!%p501_p4)
}
  0x2a   :  { %s505_s27 = scalar_lea.vmem %s45_s10, 2048  ;;  %p510_p6 = scmp.lt.s32.totalorder %s45_s10, %s45_s10 }
  0x2b   :  { %p506_p5 = scmp.ne.s32.totalorder %s45_s10, %s505_s27  ;;  %p511_p7 = scmp.lt.s32.totalorder %s505_s27, %s505_s27 }
  0x2d   :  { %p512_p8 = por %p511_p7, %p510_p6 }
  0x2f   :  { %p513_p9 = pnand %p512_p8, %p506_p5 }
  0x31   :  { %516 = shalt.err (!%p513_p9)
}
  0x32   :  { %50 = dma.hbm_to_vmem [thread:$0]  %s664_s4, 2048, %s45_s10, [#allocation6], %s546_s28, %s546_s28, %s547_s29  }
  0x33   :  { %539 = dma.done.wait [#allocation3], 128  }
  0x34   :  { %540 = vsyncadd [#allocation3], 4294967168 }
  0x35   :  { %541 = dma.done.wait [#allocation6], 4096  }
  0x36   :  { %542 = vsyncadd [#allocation6], 4294963200  ;;  %v550_v0 = vmov 0.0|0.0   ;;  %vm551_vm0 = vmmov 0   ;;  %v552_v1 = vmov 0.0   ;;  %v61_v2 = vld [vmem:[#allocation5] sm:$0xff] }
  0x37   :  { %392 = vmatprep.subr.bf16.mxu0 %v550_v0  ;;  %354 = vmatprep.mubr.msk.f32.mxu0 %vm551_vm0, %v552_v1  ;;  %v62_v3 = vld [vmem:[#allocation5 + $0x8] sm:$0xff]  ;;  %v63_v4 = vld [vmem:[#allocation5 + $0x10] sm:$0xff]  ;;  %v64_v6 = vld [vmem:[#allocation5 + $0x18] sm:$0xff]  ;;  %s553_s7 = smov [#allocation8]  }
  0x38   :  { %416 = vmatprep.subr.bf16.mxu1 %v550_v0  ;;  %389 = vmatprep.mubr.msk.f32.mxu1 %vm551_vm0, %v552_v1  ;;  %v393_v5 = vpack.c.bf16 %v62_v3, %v61_v2  ;;  %v396_v7 = vpack.c.bf16 %v64_v6, %v63_v4  ;;  %v65_v8 = vld [vmem:[#allocation5 + $0x20] sm:$0xff]  ;;  %v66_v9 = vld [vmem:[#allocation5 + $0x28] sm:$0xff]  ;;  %v67_v11 = vld [vmem:[#allocation5 + $0x30] sm:$0xff]  ;;  %v169_v6 = vlaneseq  ;;  %s277_s8 = sshll.u32 %s553_s7, 4  ;;  %s278_s8 = int_to_ptr.vmem [resolvable:$true] %s277_s8 }
  0x39   :  { %v399_v10 = vpack.c.bf16 %v66_v9, %v65_v8  ;;  %v68_v12 = vld [vmem:[#allocation5 + $0x38] sm:$0xff]  ;;  %v69_v14 = vld [vmem:[#allocation5 + $0x40] sm:$0xff]  ;;  %v70_v15 = vld [vmem:[#allocation5 + $0x48] sm:$0xff]  ;;  %s517_s9 = scalar_lea.vmem %s278_s8, 128  ;;  %p522_p11 = scmp.lt.s32.totalorder %s278_s8, %s278_s8 }
  0x3a   :  { %394 = vmatpush3.bf16.msra.mxu0 %v393_v5  ;;  %v402_v13 = vpack.c.bf16 %v68_v12, %v67_v11  ;;  %v405_v16 = vpack.c.bf16 %v70_v15, %v69_v14  ;;  %v71_v17 = vld [vmem:[#allocation5 + $0x50] sm:$0xff]  ;;  %v72_v18 = vld [vmem:[#allocation5 + $0x58] sm:$0xff]  ;;  %v73_v20 = vld [vmem:[#allocation5 + $0x60] sm:$0xff]  ;;  %p518_p10 = scmp.ne.s32.totalorder %s278_s8, %s517_s9  ;;  %p523_p12 = scmp.lt.s32.totalorder %s517_s9, %s517_s9 }
  0x3b   :  { %395 = vmatprep.subr.bf16.mxu0 %v550_v0  ;;  %v408_v19 = vpack.c.bf16 %v72_v18, %v71_v17  ;;  %v74_v21 = vld [vmem:[#allocation5 + $0x68] sm:$0xff]  ;;  %v75_v23 = vld [vmem:[#allocation5 + $0x70] sm:$0xff]  ;;  %v76_v24 = vld [vmem:[#allocation5 + $0x78] sm:$0xff] }
  0x3c   :  { %v411_v22 = vpack.c.bf16 %v74_v21, %v73_v20  ;;  %v414_v25 = vpack.c.bf16 %v76_v24, %v75_v23  ;;  %v60_v26 = vld [vmem:[#allocation2] sm:$0xff]  ;;  %v184_v27 = vld [vmem:[#allocation7] sm:$0xff]  ;;  %v185_v28 = vld [vmem:[#allocation7 + $0x8] sm:$0xff]  ;;  %p524_p13 = por %p523_p12, %p522_p11 }
  0x3d   :  { %v417_v29 = vpack.c.bf16 %v185_v28, %v184_v27  ;;  %v186_v30 = vld [vmem:[#allocation7 + $0x10] sm:$0xff]  ;;  %v187_v31 = vld [vmem:[#allocation7 + $0x18] sm:$0xff]  ;;  %v188_v33 = vld [vmem:[#allocation7 + $0x20] sm:$0xff] }
  0x3e   :  { %397 = vmatpush3.bf16.msra.mxu0 %v396_v7  ;;  %v420_v32 = vpack.c.bf16 %v187_v31, %v186_v30  ;;  %v189_v34 = vld [vmem:[#allocation7 + $0x28] sm:$0xff]  ;;  %v190_v36 = vld [vmem:[#allocation7 + $0x30] sm:$0xff]  ;;  %v191_v37 = vld [vmem:[#allocation7 + $0x38] sm:$0xff]  ;;  %v170_v7 = vshrl.u32 %v169_v6, 7  ;;  %p525_p0 = pnand %p524_p13, %p518_p10 }
  0x3f   :  { %398 = vmatprep.subr.bf16.mxu0 %v550_v0  ;;  %418 = vmatpush3.bf16.msra.mxu1 %v417_v29  ;;  %v423_v35 = vpack.c.bf16 %v189_v34, %v188_v33  ;;  %v426_v38 = vpack.c.bf16 %v191_v37, %v190_v36  ;;  %v192_v39 = vld [vmem:[#allocation7 + $0x40] sm:$0xff]  ;;  %v193_v40 = vld [vmem:[#allocation7 + $0x48] sm:$0xff]  ;;  %v194_v42 = vld [vmem:[#allocation7 + $0x50] sm:$0xff] }
  0x40   :  { %419 = vmatprep.subr.bf16.mxu1 %v550_v0  ;;  %v429_v41 = vpack.c.bf16 %v193_v40, %v192_v39  ;;  %v195_v43 = vld [vmem:[#allocation7 + $0x58] sm:$0xff]  ;;  %v196_v45 = vld [vmem:[#allocation7 + $0x60] sm:$0xff]  ;;  %v197_v46 = vld [vmem:[#allocation7 + $0x68] sm:$0xff]  ;;  %v171_v9 = vsub.s32 0, %v170_v7 }
  0x41   :  { %v432_v44 = vpack.c.bf16 %v195_v43, %v194_v42  ;;  %v435_v47 = vpack.c.bf16 %v197_v46, %v196_v45  ;;  %v198_v48 = vld [vmem:[#allocation7 + $0x70] sm:$0xff]  ;;  %v199_v49 = vld [vmem:[#allocation7 + $0x78] sm:$0xff] }
  0x42   :  { %400 = vmatpush3.bf16.msra.mxu0 %v399_v10  ;;  %v438_v50 = vpack.c.bf16 %v199_v49, %v198_v48  ;;  %v164_v8 = vld [vmem:[%s662_s2] sm:$0x1] }
  0x43   :  { %401 = vmatprep.subr.bf16.mxu0 %v550_v0  ;;  %421 = vmatpush3.bf16.msra.mxu1 %v420_v32 }
  0x44   :  { %422 = vmatprep.subr.bf16.mxu1 %v550_v0 }
  0x46   :  { %403 = vmatpush3.bf16.msra.mxu0 %v402_v13  ;;  %v287_v13 = vld [vmem:[%s663_s3] ss:$0 sm:$0xff] }
  0x47   :  { %404 = vmatprep.subr.bf16.mxu0 %v550_v0  ;;  %424 = vmatpush3.bf16.msra.mxu1 %v423_v35 }
  0x48   :  { %425 = vmatprep.subr.bf16.mxu1 %v550_v0 }
  0x4a   :  { %406 = vmatpush3.bf16.msra.mxu0 %v405_v16 }
  0x4b   :  { %407 = vmatprep.subr.bf16.mxu0 %v550_v0  ;;  %427 = vmatpush3.bf16.msra.mxu1 %v426_v38 }
  0x4c   :  { %428 = vmatprep.subr.bf16.mxu1 %v550_v0 }
  0x4e   :  { %409 = vmatpush3.bf16.msra.mxu0 %v408_v19 }
  0x4f   :  { %410 = vmatprep.subr.bf16.mxu0 %v550_v0  ;;  %430 = vmatpush3.bf16.msra.mxu1 %v429_v41 }
  0x50   :  { %431 = vmatprep.subr.bf16.mxu1 %v550_v0 }
  0x52   :  { %412 = vmatpush3.bf16.msra.mxu0 %v411_v22 }
  0x53   :  { %413 = vmatprep.subr.bf16.mxu0 %v550_v0  ;;  %433 = vmatpush3.bf16.msra.mxu1 %v432_v44 }
  0x54   :  { %434 = vmatprep.subr.bf16.mxu1 %v550_v0 }
  0x56   :  { %415 = vmatpush3.bf16.msra.mxu0 %v414_v25 }
  0x57   :  { %436 = vmatpush3.bf16.msra.mxu1 %v435_v47 }
  0x58   :  { %437 = vmatprep.subr.bf16.mxu1 %v550_v0 }
  0x59   :  { %355 = vmatmul.mubr.f32.vlgmr.msra.gmra.mrb[0].mxu0 %v60_v26 }
  0x5b   :  { %439 = vmatpush3.bf16.msra.mxu1 %v438_v50 }
 0x12c   :  { %v143_v51 = vpop.f32.mrb[0].mxu0 }
 0x12d   :  { %v147_v52 = vrot.slane %v143_v51, 4  ;;  %v356_v53 = vpop.f32.mrb[1].mxu0 }
 0x12f   :  { %v148_v54 = vadd.f32 %v147_v52, %v143_v51 }
 0x131   :  { %v149_v55 = vrot.slane %v148_v54, 2 }
 0x133   :  { %v150_v56 = vadd.f32 %v149_v55, %v148_v54 }
 0x135   :  { %v151_v57 = vrot.slane %v150_v56, 1 }
 0x137   :  { %v152_v58 = vadd.f32 %v151_v57, %v150_v56 }
 0x139   :  { %v154_v59 = vmul.f32 0.125, %v152_v58 }
 0x13b   :  { %v155_v60 = vsub.f32 %v143_v51, %v154_v59 }
 0x13d   :  { %v156_v61 = vmul.f32 %v155_v60, %v155_v60 }
 0x13f   :  { %v157_v62 = vrot.slane %v156_v61, 4 }
 0x141   :  { %v158_v63 = vadd.f32 %v157_v62, %v156_v61 }
 0x143   :  { %v159_v1 = vrot.slane %v158_v63, 2 }
 0x145   :  { %v160_v2 = vadd.f32 %v159_v1, %v158_v63 }
 0x147   :  { %v161_v0 = vrot.slane %v160_v2, 1 }
 0x149   :  { %v162_v3 = vadd.f32 %v161_v0, %v160_v2 }
 0x14b   :  { %v163_v4 = vmul.f32 0.125, %v162_v3 }
 0x14d   :  { %v165_v5 = vadd.f32 1e-05, %v163_v4 }
 0x14f   :  { %449 = vrsqrt.f32 %v165_v5 }
 0x159   :  { %v450_v10 = vpop.eup %449 }
 0x15a   :  { %v167_v11 = vmul.f32 %v450_v10, %v164_v8 }
 0x15c   :  { %v172_v12 = vrot.slane %v167_v11, %v171_v9 }
 0x15e   :  { %v174_v14 = vmul.f32 %v172_v12, %v155_v60 }
 0x160   :  { %v182_v15 = vadd.f32 %v287_v13, %v174_v14 }
 0x162   :  { %v183_v16 = vmax.f32 %v182_v15, 0.0 }
 0x164   :  { %390 = vmatmul.mubr.f32.vlgmr.msra.gmra.mrb[0].mxu1 %v183_v16 }
 0x237   :  { %v266_v17 = vpop.f32.mrb[0].mxu1 }
 0x238   :  { %270 = vst [vmem:[#allocation8] sm:$0xff] %v266_v17  ;;  %v391_v18 = vpop.f32.mrb[1].mxu1 }
 0x239   :  { %528 = shalt.err (!%p525_p0)
}
 0x23a   :  { %s529_s3 = scalar_lea.hbm %s665_s5, 128 }
 0x23b   :  { %p530_p1 = scmp.ne.s32.totalorder %s665_s5, %s529_s3  ;;  %p533_p2 = scmp.lt.u32.totalorder %s529_s3, %s665_s5 }
 0x23d   :  { %p535_p3 = pnand %p533_p2, %p530_p1 }
 0x23f   :  { %538 = shalt.err (!%p535_p3)
}
 0x240   :  { %280 = dma.vmem_to_hbm [thread:$0]  %s278_s8, 128, %s665_s5, [#allocation4]  }
 0x241   :  { %543 = dma.done.wait [#allocation4], 128  }
 0x242   :  { %544 = vsyncadd [#allocation4], 4294967168 }
 0x243   :  { %284 = vsyncpa [#allocation3], 1 }
 0x244   :  { %285 = vsyncpa [#allocation6], 1 }
 0x245   :  { %286 = vsyncpa [#allocation4], 1 }

</bundles_post_ra>
